<compile_context>
chip_gen: v6e
topology: v6e:2x2x1
jax: 0.10.0
libtpu: 0.0.40
codegen_flags: <defaults>
</compile_context>

<pallas_src>
import jax
import jax.numpy as jnp
from jax.experimental import pallas as pl
from jax.experimental.pallas import tpu as pltpu


# ---- SNN hyper-parameters (synthetic, deterministic) ----
NUM_STEPS = 8        # T
BETA = 0.95          # membrane decay
THRESHOLD = 1.0      # spike threshold (reset by subtraction); ==1.0 below


def _snn_attack_kernel(x_ref, w1_ref, b1_ref, w2_ref, b2_ref, out_ref,
                       spk1_ref, cur2_ref):
    """One batch tile: T LIF steps, writes sum_t spk2_t of shape (bt, Op)."""
    x = x_ref[...]                       # (bt, D_in)   bf16
    w1 = w1_ref[...]                     # (D_in, H)    bf16
    b1 = b1_ref[...]                     # (1, H)       f32
    w2 = w2_ref[...]                     # (H, Op)      bf16
    b2 = b2_ref[...]                     # (1, Op)      f32

    bt = x.shape[0]
    H = w1.shape[1]
    Op = w2.shape[1]
    T = NUM_STEPS

    # Layer-1 input current is identical every time step -> a single MXU call.
    # Bias broadcast hoisted (JAX does not CSE broadcast_in_dim).
    cur1 = jnp.dot(x, w1, preferred_element_type=jnp.float32)
    cur1 = cur1 + jnp.broadcast_to(b1, (bt, H))                    # (bt, H) f32

    # ---- Phase 1: layer-1 LIF recurrence (pure VPU) ----
    # Spikes go straight into a preallocated VMEM scratch (no concatenate ->
    # no value-relayout copies on the serial critical path).
    mem1 = jnp.zeros((bt, H), jnp.float32)
    for t in range(T):                   # static T=8, fully unrolled at trace
        mem1 = BETA * mem1 + cur1
        spk1 = (mem1 > THRESHOLD).astype(jnp.float32)
        mem1 = mem1 - spk1               # THRESHOLD == 1.0 -> no multiply
        spk1_ref[pl.ds(t * bt, bt), :] = spk1

    # ---- One batched MXU call instead of T tiny per-step fc2 matmuls ----
    # Spikes are exactly 0/1, so the bf16 cast is lossless.
    cur2_ref[...] = (
        jnp.dot(spk1_ref[...].astype(jnp.bfloat16), w2,
                preferred_element_type=jnp.float32)
        + jnp.broadcast_to(b2, (T * bt, Op)))

    # ---- Phase 2: layer-2 LIF recurrence over the T slices (pure VPU) ----
    mem2 = jnp.zeros((bt, Op), jnp.float32)
    spk_sum = jnp.zeros((bt, Op), jnp.float32)
    for t in range(T):
        cur2 = cur2_ref[pl.ds(t * bt, bt), :]
        mem2 = BETA * mem2 + cur2
        spk2 = (mem2 > THRESHOLD).astype(jnp.float32)
        mem2 = mem2 - spk2               # THRESHOLD == 1.0 -> no multiply
        spk_sum = spk_sum + spk2

    out_ref[...] = spk_sum               # (bt, Op): lane-dense f32 stores


def _round_up(n, m):
    return ((n + m - 1) // m) * m


def prepare_snn_params(w1, b1, w2, b2):
    """One-time constant prep (cast + pad). Call ONCE before the PGD loop."""
    d_in, hidden = w1.shape
    num_out = w2.shape[1]
    out_pad = _round_up(max(num_out, 128), 128)   # lane-dense output block
    w1_bf = jnp.asarray(w1, jnp.bfloat16)                           # (D_in, H)
    b1_2d = jnp.asarray(b1, jnp.float32).reshape(1, hidden)         # (1, H)
    w2_p = jnp.zeros((hidden, out_pad), jnp.bfloat16).at[:, :num_out].set(
        jnp.asarray(w2, jnp.bfloat16))                              # (H, Op)
    b2_p = jnp.zeros((1, out_pad), jnp.float32).at[:, :num_out].set(
        jnp.asarray(b2, jnp.float32).reshape(1, num_out))           # (1, Op)
    return dict(w1=w1_bf, b1=b1_2d, w2=w2_p, b2=b2_p,
                d_in=d_in, hidden=hidden, num_out=num_out, out_pad=out_pad)


def attack_wrapper_forward(x_nchw, params, *, batch_tile=256):
    """x_nchw: (B, C, H, W). Returns spk_rec.sum(dim=0): (B, num_outputs)."""
    w1, b1, w2, b2 = params["w1"], params["b1"], params["w2"], params["b2"]
    d_in, hidden = params["d_in"], params["hidden"]
    num_out, out_pad = params["num_out"], params["out_pad"]

    B = x_nchw.shape[0]
    # torch: x.view(B, -1).  bf16 cast feeds the MXU and halves the x DMA.
    x_flat = x_nchw.reshape(B, -1).astype(jnp.bfloat16)
    assert x_flat.shape[1] == d_in

    if B <= batch_tile:
        # Small batch: single tile, pass x unpadded (no extra HBM pass).
        bt, Bp, x_in = B, B, x_flat
    else:
        # Large (real PGD) batch: tile over batch; pad only if ragged.  Padded
        # rows may spike (bias alone can drive them past threshold) but are
        # sliced off below -- do not reduce over the padded output block.
        bt = batch_tile
        Bp = _round_up(B, bt)
        x_in = x_flat if Bp == B else (
            jnp.zeros((Bp, d_in), jnp.bfloat16).at[:B].set(x_flat))
    grid = (Bp // bt,)

    whole = lambda i: (0, 0)             # weights resident across batch tiles

    out_p = pl.pallas_call(
        _snn_attack_kernel,
        out_shape=jax.ShapeDtypeStruct((Bp, out_pad), jnp.float32),
        grid=grid,
        in_specs=[
            pl.BlockSpec((bt, d_in), lambda i: (i, 0)),
            pl.BlockSpec((d_in, hidden), whole),
            pl.BlockSpec((1, hidden), whole),
            pl.BlockSpec((hidden, out_pad), whole),
            pl.BlockSpec((1, out_pad), whole),
        ],
        out_specs=pl.BlockSpec((bt, out_pad), lambda i: (i, 0)),
        scratch_shapes=[
            pltpu.VMEM((NUM_STEPS * bt, hidden), jnp.float32),   # spk1 stack
            pltpu.VMEM((NUM_STEPS * bt, out_pad), jnp.float32),  # cur2 stack
        ],
        compiler_params=pltpu.CompilerParams(
            dimension_semantics=("parallel",)),  # v7x: 2 TCs split batch tiles
    )(x_in, w1, b1, w2, b2)

    return out_p[:B, :num_out]


def _reference_forward(x_nchw, w1, b1, w2, b2):
    """Pure-JAX reference with the same bf16-MXU / f32-LIF numerics."""
    B = x_nchw.shape[0]
    x = x_nchw.reshape(B, -1).astype(jnp.bfloat16)
    w1b = jnp.asarray(w1, jnp.bfloat16)
    w2b = jnp.asarray(w2, jnp.bfloat16)
    b1f = jnp.asarray(b1, jnp.float32)
    b2f = jnp.asarray(b2, jnp.float32)
    cur1 = jnp.dot(x, w1b, preferred_element_type=jnp.float32) + b1f[None, :]
    mem1 = jnp.zeros((B, w1.shape[1]), jnp.float32)
    mem2 = jnp.zeros((B, w2.shape[1]), jnp.float32)
    acc = jnp.zeros((B, w2.shape[1]), jnp.float32)
    for _ in range(NUM_STEPS):
        mem1 = BETA * mem1 + cur1
        spk1 = (mem1 > THRESHOLD).astype(jnp.float32)
        mem1 = mem1 - spk1 * THRESHOLD
        cur2 = jnp.dot(spk1.astype(jnp.bfloat16), w2b,
                       preferred_element_type=jnp.float32) + b2f[None, :]
        mem2 = BETA * mem2 + cur2
        spk2 = (mem2 > THRESHOLD).astype(jnp.float32)
        mem2 = mem2 - spk2 * THRESHOLD
        acc = acc + spk2
    return acc


if __name__ == "__main__":
    # Small shapes consistent with the forward: NCHW image input, flattened.
    B, C, H_IMG, W_IMG = 2, 4, 16, 16          # x: (2, 4, 16, 16) -> D_in = 1024
    D_IN = C * H_IMG * W_IMG
    HIDDEN = 32
    NUM_OUT = 10

    key = jax.random.PRNGKey(0)
    kx, k1, k2, k3, k4, kx2 = jax.random.split(key, 6)

    x = jax.random.uniform(kx, (B, C, H_IMG, W_IMG), jnp.float32)  # image in [0,1)
    # Scaled so the LIF layers actually fire within NUM_STEPS.
    w1 = jax.random.normal(k1, (D_IN, HIDDEN), jnp.float32) * (2.0 / jnp.sqrt(D_IN))
    b1 = jax.random.normal(k2, (HIDDEN,), jnp.float32) * 0.1
    w2 = jax.random.normal(k3, (HIDDEN, NUM_OUT), jnp.float32) * (2.0 / jnp.sqrt(HIDDEN))
    b2 = jax.random.normal(k4, (NUM_OUT,), jnp.float32) * 0.1

    # Constant weight prep happens ONCE, outside the per-iteration attack path.
    params = prepare_snn_params(w1, b1, w2, b2)

    # --- small-batch path (gridless-equivalent, grid=(1,)) ---
    out = attack_wrapper_forward(x, params)
    out = jax.block_until_ready(out)
    ref = _reference_forward(x, w1, b1, w2, b2)
    assert out.shape == (B, NUM_OUT), out.shape
    assert jnp.allclose(out, ref, atol=1e-5), (out, ref)

    # --- batch-tiled path (grid over batch tiles, "parallel" for megacore) ---
    B_BIG = 64
    x_big = jax.random.uniform(kx2, (B_BIG, C, H_IMG, W_IMG), jnp.float32)
    out_big = jax.block_until_ready(
        attack_wrapper_forward(x_big, params, batch_tile=16))
    ref_big = _reference_forward(x_big, w1, b1, w2, b2)
    assert out_big.shape == (B_BIG, NUM_OUT), out_big.shape
    assert jnp.allclose(out_big, ref_big, atol=1e-5), (out_big, ref_big)

    print("KERNEL_OK")
</pallas_src>

<mosaic_0001>
module attributes {stable_mosaic.version = 11 : i64} {
  func.func @_snn_attack_kernel(%arg0: i32, %arg1: memref<2x1024xbf16, #tpu.memory_space<vmem>>, %arg2: memref<1024x32xbf16, #tpu.memory_space<vmem>>, %arg3: memref<1x32xf32, #tpu.memory_space<vmem>>, %arg4: memref<32x128xbf16, #tpu.memory_space<vmem>>, %arg5: memref<1x128xf32, #tpu.memory_space<vmem>>, %arg6: memref<2x128xf32, #tpu.memory_space<vmem>>, %arg7: memref<16x32xf32, #tpu.memory_space<vmem>>, %arg8: memref<16x128xf32, #tpu.memory_space<vmem>>) attributes {dimension_semantics = [#tpu.dimension_semantics<parallel>], iteration_bounds = array<i64: 1>, scalar_prefetch = 0 : i64, scratch_operands = 2 : i64, tpu.core_type = #tpu.core_type<tc>, window_params = [{transform_indices = @transform_0, window_bounds = array<i64: 2, 1024>}, {pipeline_mode = #tpu.pipeline_mode<synchronous>, transform_indices = @transform_1, window_bounds = array<i64: 1024, 32>}, {pipeline_mode = #tpu.pipeline_mode<synchronous>, transform_indices = @transform_2, window_bounds = array<i64: 1, 32>}, {pipeline_mode = #tpu.pipeline_mode<synchronous>, transform_indices = @transform_3, window_bounds = array<i64: 32, 128>}, {pipeline_mode = #tpu.pipeline_mode<synchronous>, transform_indices = @transform_4, window_bounds = array<i64: 1, 128>}, {transform_indices = @transform_5, window_bounds = array<i64: 2, 128>}]} {
    %c0 = arith.constant 0 : index
    %c0_0 = arith.constant 0 : index
    %0 = vector.load %arg1[%c0, %c0_0] : memref<2x1024xbf16, #tpu.memory_space<vmem>>, vector<2x1024xbf16>
    %c0_1 = arith.constant 0 : index
    %c0_2 = arith.constant 0 : index
    %1 = vector.load %arg2[%c0_1, %c0_2] : memref<1024x32xbf16, #tpu.memory_space<vmem>>, vector<1024x32xbf16>
    %c0_3 = arith.constant 0 : index
    %c0_4 = arith.constant 0 : index
    %2 = vector.load %arg3[%c0_3, %c0_4] : memref<1x32xf32, #tpu.memory_space<vmem>>, vector<1x32xf32>
    %c0_5 = arith.constant 0 : index
    %c0_6 = arith.constant 0 : index
    %3 = vector.load %arg4[%c0_5, %c0_6] : memref<32x128xbf16, #tpu.memory_space<vmem>>, vector<32x128xbf16>
    %c0_7 = arith.constant 0 : index
    %c0_8 = arith.constant 0 : index
    %4 = vector.load %arg5[%c0_7, %c0_8] : memref<1x128xf32, #tpu.memory_space<vmem>>, vector<1x128xf32>
    %cst = arith.constant dense<0.000000e+00> : vector<2x32xf32>
    %5 = tpu.matmul %0, %1, %cst {dimension_numbers = #tpu.dot_dimension_numbers<[1], [0], [0], [1], [0, 0, 1, 1], [], []>} : vector<2x1024xbf16>, vector<1024x32xbf16>, vector<2x32xf32> -> vector<2x32xf32>
    %6 = vector.shape_cast %2 : vector<1x32xf32> to vector<1x32xf32>
    %7 = vector.broadcast %6 : vector<1x32xf32> to vector<2x32xf32>
    %8 = arith.addf %5, %7 : vector<2x32xf32>
    %cst_9 = arith.constant 0.000000e+00 : f32
    %9 = vector.broadcast %cst_9 : f32 to vector<2x32xf32>
    %cst_10 = arith.constant 0.949999988 : f32
    %10 = vector.broadcast %cst_10 : f32 to vector<2x32xf32>
    %11 = arith.mulf %10, %9 : vector<2x32xf32>
    %12 = arith.addf %11, %8 : vector<2x32xf32>
    %cst_11 = arith.constant 1.000000e+00 : f32
    %13 = vector.broadcast %cst_11 : f32 to vector<2x32xf32>
    %14 = arith.cmpf ogt, %12, %13 : vector<2x32xf32>
    %15 = arith.extui %14 : vector<2x32xi1> to vector<2x32xi32>
    %16 = arith.sitofp %15 : vector<2x32xi32> to vector<2x32xf32>
    %17 = arith.subf %12, %16 : vector<2x32xf32>
    %c0_12 = arith.constant 0 : index
    %c0_13 = arith.constant 0 : index
    %18 = vector.load %arg7[%c0_12, %c0_13] : memref<16x32xf32, #tpu.memory_space<vmem>>, vector<2x32xf32>
    tpu.vector_store %arg7[%c0_12, %c0_13], %16 {strides = array<i32>} : memref<16x32xf32, #tpu.memory_space<vmem>>, vector<2x32xf32>,
    %cst_14 = arith.constant 0.949999988 : f32
    %19 = vector.broadcast %cst_14 : f32 to vector<2x32xf32>
    %20 = arith.mulf %19, %17 : vector<2x32xf32>
    %21 = arith.addf %20, %8 : vector<2x32xf32>
    %cst_15 = arith.constant 1.000000e+00 : f32
    %22 = vector.broadcast %cst_15 : f32 to vector<2x32xf32>
    %23 = arith.cmpf ogt, %21, %22 : vector<2x32xf32>
    %24 = arith.extui %23 : vector<2x32xi1> to vector<2x32xi32>
    %25 = arith.sitofp %24 : vector<2x32xi32> to vector<2x32xf32>
    %26 = arith.subf %21, %25 : vector<2x32xf32>
    %c2 = arith.constant 2 : index
    %c0_16 = arith.constant 0 : index
    %27 = vector.load %arg7[%c2, %c0_16] : memref<16x32xf32, #tpu.memory_space<vmem>>, vector<2x32xf32>
    tpu.vector_store %arg7[%c2, %c0_16], %25 {strides = array<i32>} : memref<16x32xf32, #tpu.memory_space<vmem>>, vector<2x32xf32>,
    %cst_17 = arith.constant 0.949999988 : f32
    %28 = vector.broadcast %cst_17 : f32 to vector<2x32xf32>
    %29 = arith.mulf %28, %26 : vector<2x32xf32>
    %30 = arith.addf %29, %8 : vector<2x32xf32>
    %cst_18 = arith.constant 1.000000e+00 : f32
    %31 = vector.broadcast %cst_18 : f32 to vector<2x32xf32>
    %32 = arith.cmpf ogt, %30, %31 : vector<2x32xf32>
    %33 = arith.extui %32 : vector<2x32xi1> to vector<2x32xi32>
    %34 = arith.sitofp %33 : vector<2x32xi32> to vector<2x32xf32>
    %35 = arith.subf %30, %34 : vector<2x32xf32>
    %c4 = arith.constant 4 : index
    %c0_19 = arith.constant 0 : index
    %36 = vector.load %arg7[%c4, %c0_19] : memref<16x32xf32, #tpu.memory_space<vmem>>, vector<2x32xf32>
    tpu.vector_store %arg7[%c4, %c0_19], %34 {strides = array<i32>} : memref<16x32xf32, #tpu.memory_space<vmem>>, vector<2x32xf32>,
    %cst_20 = arith.constant 0.949999988 : f32
    %37 = vector.broadcast %cst_20 : f32 to vector<2x32xf32>
    %38 = arith.mulf %37, %35 : vector<2x32xf32>
    %39 = arith.addf %38, %8 : vector<2x32xf32>
    %cst_21 = arith.constant 1.000000e+00 : f32
    %40 = vector.broadcast %cst_21 : f32 to vector<2x32xf32>
    %41 = arith.cmpf ogt, %39, %40 : vector<2x32xf32>
    %42 = arith.extui %41 : vector<2x32xi1> to vector<2x32xi32>
    %43 = arith.sitofp %42 : vector<2x32xi32> to vector<2x32xf32>
    %44 = arith.subf %39, %43 : vector<2x32xf32>
    %c6 = arith.constant 6 : index
    %c0_22 = arith.constant 0 : index
    %45 = vector.load %arg7[%c6, %c0_22] : memref<16x32xf32, #tpu.memory_space<vmem>>, vector<2x32xf32>
    tpu.vector_store %arg7[%c6, %c0_22], %43 {strides = array<i32>} : memref<16x32xf32, #tpu.memory_space<vmem>>, vector<2x32xf32>,
    %cst_23 = arith.constant 0.949999988 : f32
    %46 = vector.broadcast %cst_23 : f32 to vector<2x32xf32>
    %47 = arith.mulf %46, %44 : vector<2x32xf32>
    %48 = arith.addf %47, %8 : vector<2x32xf32>
    %cst_24 = arith.constant 1.000000e+00 : f32
    %49 = vector.broadcast %cst_24 : f32 to vector<2x32xf32>
    %50 = arith.cmpf ogt, %48, %49 : vector<2x32xf32>
    %51 = arith.extui %50 : vector<2x32xi1> to vector<2x32xi32>
    %52 = arith.sitofp %51 : vector<2x32xi32> to vector<2x32xf32>
    %53 = arith.subf %48, %52 : vector<2x32xf32>
    %c8 = arith.constant 8 : index
    %c0_25 = arith.constant 0 : index
    %54 = vector.load %arg7[%c8, %c0_25] : memref<16x32xf32, #tpu.memory_space<vmem>>, vector<2x32xf32>
    tpu.vector_store %arg7[%c8, %c0_25], %52 {strides = array<i32>} : memref<16x32xf32, #tpu.memory_space<vmem>>, vector<2x32xf32>,
    %cst_26 = arith.constant 0.949999988 : f32
    %55 = vector.broadcast %cst_26 : f32 to vector<2x32xf32>
    %56 = arith.mulf %55, %53 : vector<2x32xf32>
    %57 = arith.addf %56, %8 : vector<2x32xf32>
    %cst_27 = arith.constant 1.000000e+00 : f32
    %58 = vector.broadcast %cst_27 : f32 to vector<2x32xf32>
    %59 = arith.cmpf ogt, %57, %58 : vector<2x32xf32>
    %60 = arith.extui %59 : vector<2x32xi1> to vector<2x32xi32>
    %61 = arith.sitofp %60 : vector<2x32xi32> to vector<2x32xf32>
    %62 = arith.subf %57, %61 : vector<2x32xf32>
    %c10 = arith.constant 10 : index
    %c0_28 = arith.constant 0 : index
    %63 = vector.load %arg7[%c10, %c0_28] : memref<16x32xf32, #tpu.memory_space<vmem>>, vector<2x32xf32>
    tpu.vector_store %arg7[%c10, %c0_28], %61 {strides = array<i32>} : memref<16x32xf32, #tpu.memory_space<vmem>>, vector<2x32xf32>,
    %cst_29 = arith.constant 0.949999988 : f32
    %64 = vector.broadcast %cst_29 : f32 to vector<2x32xf32>
    %65 = arith.mulf %64, %62 : vector<2x32xf32>
    %66 = arith.addf %65, %8 : vector<2x32xf32>
    %cst_30 = arith.constant 1.000000e+00 : f32
    %67 = vector.broadcast %cst_30 : f32 to vector<2x32xf32>
    %68 = arith.cmpf ogt, %66, %67 : vector<2x32xf32>
    %69 = arith.extui %68 : vector<2x32xi1> to vector<2x32xi32>
    %70 = arith.sitofp %69 : vector<2x32xi32> to vector<2x32xf32>
    %71 = arith.subf %66, %70 : vector<2x32xf32>
    %c12 = arith.constant 12 : index
    %c0_31 = arith.constant 0 : index
    %72 = vector.load %arg7[%c12, %c0_31] : memref<16x32xf32, #tpu.memory_space<vmem>>, vector<2x32xf32>
    tpu.vector_store %arg7[%c12, %c0_31], %70 {strides = array<i32>} : memref<16x32xf32, #tpu.memory_space<vmem>>, vector<2x32xf32>,
    %cst_32 = arith.constant 0.949999988 : f32
    %73 = vector.broadcast %cst_32 : f32 to vector<2x32xf32>
    %74 = arith.mulf %73, %71 : vector<2x32xf32>
    %75 = arith.addf %74, %8 : vector<2x32xf32>
    %cst_33 = arith.constant 1.000000e+00 : f32
    %76 = vector.broadcast %cst_33 : f32 to vector<2x32xf32>
    %77 = arith.cmpf ogt, %75, %76 : vector<2x32xf32>
    %78 = arith.extui %77 : vector<2x32xi1> to vector<2x32xi32>
    %79 = arith.sitofp %78 : vector<2x32xi32> to vector<2x32xf32>
    %c14 = arith.constant 14 : index
    %c0_34 = arith.constant 0 : index
    %80 = vector.load %arg7[%c14, %c0_34] : memref<16x32xf32, #tpu.memory_space<vmem>>, vector<2x32xf32>
    tpu.vector_store %arg7[%c14, %c0_34], %79 {strides = array<i32>} : memref<16x32xf32, #tpu.memory_space<vmem>>, vector<2x32xf32>,
    %c0_35 = arith.constant 0 : index
    %c0_36 = arith.constant 0 : index
    %81 = vector.load %arg7[%c0_35, %c0_36] : memref<16x32xf32, #tpu.memory_space<vmem>>, vector<16x32xf32>
    %82 = arith.truncf %81 : vector<16x32xf32> to vector<16x32xbf16>
    %cst_37 = arith.constant dense<0.000000e+00> : vector<16x128xf32>
    %83 = tpu.matmul %82, %3, %cst_37 {dimension_numbers = #tpu.dot_dimension_numbers<[1], [0], [0], [1], [0, 0, 1, 1], [], []>} : vector<16x32xbf16>, vector<32x128xbf16>, vector<16x128xf32> -> vector<16x128xf32>
    %84 = vector.shape_cast %4 : vector<1x128xf32> to vector<1x128xf32>
    %85 = vector.broadcast %84 : vector<1x128xf32> to vector<16x128xf32>
    %86 = arith.addf %83, %85 : vector<16x128xf32>
    %c0_38 = arith.constant 0 : index
    %c0_39 = arith.constant 0 : index
    %87 = vector.load %arg8[%c0_38, %c0_39] : memref<16x128xf32, #tpu.memory_space<vmem>>, vector<16x128xf32>
    tpu.vector_store %arg8[%c0_38, %c0_39], %86 {strides = array<i32>} : memref<16x128xf32, #tpu.memory_space<vmem>>, vector<16x128xf32>,
    %cst_40 = arith.constant 0.000000e+00 : f32
    %88 = vector.broadcast %cst_40 : f32 to vector<2x128xf32>
    %cst_41 = arith.constant 0.000000e+00 : f32
    %89 = vector.broadcast %cst_41 : f32 to vector<2x128xf32>
    %c0_42 = arith.constant 0 : index
    %c0_43 = arith.constant 0 : index
    %90 = vector.load %arg8[%c0_42, %c0_43] : memref<16x128xf32, #tpu.memory_space<vmem>>, vector<2x128xf32>
    %cst_44 = arith.constant 0.949999988 : f32
    %91 = vector.broadcast %cst_44 : f32 to vector<2x128xf32>
    %92 = arith.mulf %91, %88 : vector<2x128xf32>
    %93 = arith.addf %92, %90 : vector<2x128xf32>
    %cst_45 = arith.constant 1.000000e+00 : f32
    %94 = vector.broadcast %cst_45 : f32 to vector<2x128xf32>
    %95 = arith.cmpf ogt, %93, %94 : vector<2x128xf32>
    %96 = arith.extui %95 : vector<2x128xi1> to vector<2x128xi32>
    %97 = arith.sitofp %96 : vector<2x128xi32> to vector<2x128xf32>
    %98 = arith.subf %93, %97 : vector<2x128xf32>
    %99 = arith.addf %89, %97 : vector<2x128xf32>
    %c2_46 = arith.constant 2 : index
    %c0_47 = arith.constant 0 : index
    %100 = vector.load %arg8[%c2_46, %c0_47] : memref<16x128xf32, #tpu.memory_space<vmem>>, vector<2x128xf32>
    %cst_48 = arith.constant 0.949999988 : f32
    %101 = vector.broadcast %cst_48 : f32 to vector<2x128xf32>
    %102 = arith.mulf %101, %98 : vector<2x128xf32>
    %103 = arith.addf %102, %100 : vector<2x128xf32>
    %cst_49 = arith.constant 1.000000e+00 : f32
    %104 = vector.broadcast %cst_49 : f32 to vector<2x128xf32>
    %105 = arith.cmpf ogt, %103, %104 : vector<2x128xf32>
    %106 = arith.extui %105 : vector<2x128xi1> to vector<2x128xi32>
    %107 = arith.sitofp %106 : vector<2x128xi32> to vector<2x128xf32>
    %108 = arith.subf %103, %107 : vector<2x128xf32>
    %109 = arith.addf %99, %107 : vector<2x128xf32>
    %c4_50 = arith.constant 4 : index
    %c0_51 = arith.constant 0 : index
    %110 = vector.load %arg8[%c4_50, %c0_51] : memref<16x128xf32, #tpu.memory_space<vmem>>, vector<2x128xf32>
    %cst_52 = arith.constant 0.949999988 : f32
    %111 = vector.broadcast %cst_52 : f32 to vector<2x128xf32>
    %112 = arith.mulf %111, %108 : vector<2x128xf32>
    %113 = arith.addf %112, %110 : vector<2x128xf32>
    %cst_53 = arith.constant 1.000000e+00 : f32
    %114 = vector.broadcast %cst_53 : f32 to vector<2x128xf32>
    %115 = arith.cmpf ogt, %113, %114 : vector<2x128xf32>
    %116 = arith.extui %115 : vector<2x128xi1> to vector<2x128xi32>
    %117 = arith.sitofp %116 : vector<2x128xi32> to vector<2x128xf32>
    %118 = arith.subf %113, %117 : vector<2x128xf32>
    %119 = arith.addf %109, %117 : vector<2x128xf32>
    %c6_54 = arith.constant 6 : index
    %c0_55 = arith.constant 0 : index
    %120 = vector.load %arg8[%c6_54, %c0_55] : memref<16x128xf32, #tpu.memory_space<vmem>>, vector<2x128xf32>
    %cst_56 = arith.constant 0.949999988 : f32
    %121 = vector.broadcast %cst_56 : f32 to vector<2x128xf32>
    %122 = arith.mulf %121, %118 : vector<2x128xf32>
    %123 = arith.addf %122, %120 : vector<2x128xf32>
    %cst_57 = arith.constant 1.000000e+00 : f32
    %124 = vector.broadcast %cst_57 : f32 to vector<2x128xf32>
    %125 = arith.cmpf ogt, %123, %124 : vector<2x128xf32>
    %126 = arith.extui %125 : vector<2x128xi1> to vector<2x128xi32>
    %127 = arith.sitofp %126 : vector<2x128xi32> to vector<2x128xf32>
    %128 = arith.subf %123, %127 : vector<2x128xf32>
    %129 = arith.addf %119, %127 : vector<2x128xf32>
    %c8_58 = arith.constant 8 : index
    %c0_59 = arith.constant 0 : index
    %130 = vector.load %arg8[%c8_58, %c0_59] : memref<16x128xf32, #tpu.memory_space<vmem>>, vector<2x128xf32>
    %cst_60 = arith.constant 0.949999988 : f32
    %131 = vector.broadcast %cst_60 : f32 to vector<2x128xf32>
    %132 = arith.mulf %131, %128 : vector<2x128xf32>
    %133 = arith.addf %132, %130 : vector<2x128xf32>
    %cst_61 = arith.constant 1.000000e+00 : f32
    %134 = vector.broadcast %cst_61 : f32 to vector<2x128xf32>
    %135 = arith.cmpf ogt, %133, %134 : vector<2x128xf32>
    %136 = arith.extui %135 : vector<2x128xi1> to vector<2x128xi32>
    %137 = arith.sitofp %136 : vector<2x128xi32> to vector<2x128xf32>
    %138 = arith.subf %133, %137 : vector<2x128xf32>
    %139 = arith.addf %129, %137 : vector<2x128xf32>
    %c10_62 = arith.constant 10 : index
    %c0_63 = arith.constant 0 : index
    %140 = vector.load %arg8[%c10_62, %c0_63] : memref<16x128xf32, #tpu.memory_space<vmem>>, vector<2x128xf32>
    %cst_64 = arith.constant 0.949999988 : f32
    %141 = vector.broadcast %cst_64 : f32 to vector<2x128xf32>
    %142 = arith.mulf %141, %138 : vector<2x128xf32>
    %143 = arith.addf %142, %140 : vector<2x128xf32>
    %cst_65 = arith.constant 1.000000e+00 : f32
    %144 = vector.broadcast %cst_65 : f32 to vector<2x128xf32>
    %145 = arith.cmpf ogt, %143, %144 : vector<2x128xf32>
    %146 = arith.extui %145 : vector<2x128xi1> to vector<2x128xi32>
    %147 = arith.sitofp %146 : vector<2x128xi32> to vector<2x128xf32>
    %148 = arith.subf %143, %147 : vector<2x128xf32>
    %149 = arith.addf %139, %147 : vector<2x128xf32>
    %c12_66 = arith.constant 12 : index
    %c0_67 = arith.constant 0 : index
    %150 = vector.load %arg8[%c12_66, %c0_67] : memref<16x128xf32, #tpu.memory_space<vmem>>, vector<2x128xf32>
    %cst_68 = arith.constant 0.949999988 : f32
    %151 = vector.broadcast %cst_68 : f32 to vector<2x128xf32>
    %152 = arith.mulf %151, %148 : vector<2x128xf32>
    %153 = arith.addf %152, %150 : vector<2x128xf32>
    %cst_69 = arith.constant 1.000000e+00 : f32
    %154 = vector.broadcast %cst_69 : f32 to vector<2x128xf32>
    %155 = arith.cmpf ogt, %153, %154 : vector<2x128xf32>
    %156 = arith.extui %155 : vector<2x128xi1> to vector<2x128xi32>
    %157 = arith.sitofp %156 : vector<2x128xi32> to vector<2x128xf32>
    %158 = arith.subf %153, %157 : vector<2x128xf32>
    %159 = arith.addf %149, %157 : vector<2x128xf32>
    %c14_70 = arith.constant 14 : index
    %c0_71 = arith.constant 0 : index
    %160 = vector.load %arg8[%c14_70, %c0_71] : memref<16x128xf32, #tpu.memory_space<vmem>>, vector<2x128xf32>
    %cst_72 = arith.constant 0.949999988 : f32
    %161 = vector.broadcast %cst_72 : f32 to vector<2x128xf32>
    %162 = arith.mulf %161, %158 : vector<2x128xf32>
    %163 = arith.addf %162, %160 : vector<2x128xf32>
    %cst_73 = arith.constant 1.000000e+00 : f32
    %164 = vector.broadcast %cst_73 : f32 to vector<2x128xf32>
    %165 = arith.cmpf ogt, %163, %164 : vector<2x128xf32>
    %166 = arith.extui %165 : vector<2x128xi1> to vector<2x128xi32>
    %167 = arith.sitofp %166 : vector<2x128xi32> to vector<2x128xf32>
    %168 = arith.addf %159, %167 : vector<2x128xf32>
    %c0_74 = arith.constant 0 : index
    %c0_75 = arith.constant 0 : index
    %169 = vector.load %arg6[%c0_74, %c0_75] : memref<2x128xf32, #tpu.memory_space<vmem>>, vector<2x128xf32>
    tpu.vector_store %arg6[%c0_74, %c0_75], %168 {strides = array<i32>} : memref<2x128xf32, #tpu.memory_space<vmem>>, vector<2x128xf32>,
    return
  }
  func.func @transform_0(%arg0: i32) -> (i32, i32) {
    %c0_i32 = arith.constant 0 : i32
    %c0_i32_0 = arith.constant 0 : i32
    return %arg0, %c0_i32 : i32, i32
  }
  func.func @transform_1(%arg0: i32) -> (i32, i32) {
    %c0_i32 = arith.constant 0 : i32
    %c0_i32_0 = arith.constant 0 : i32
    %c0_i32_1 = arith.constant 0 : i32
    return %c0_i32, %c0_i32_0 : i32, i32
  }
  func.func @transform_2(%arg0: i32) -> (i32, i32) {
    %c0_i32 = arith.constant 0 : i32
    %c0_i32_0 = arith.constant 0 : i32
    %c0_i32_1 = arith.constant 0 : i32
    return %c0_i32, %c0_i32_0 : i32, i32
  }
  func.func @transform_3(%arg0: i32) -> (i32, i32) {
    %c0_i32 = arith.constant 0 : i32
    %c0_i32_0 = arith.constant 0 : i32
    %c0_i32_1 = arith.constant 0 : i32
    return %c0_i32, %c0_i32_0 : i32, i32
  }
  func.func @transform_4(%arg0: i32) -> (i32, i32) {
    %c0_i32 = arith.constant 0 : i32
    %c0_i32_0 = arith.constant 0 : i32
    %c0_i32_1 = arith.constant 0 : i32
    return %c0_i32, %c0_i32_0 : i32, i32
  }
  func.func @transform_5(%arg0: i32) -> (i32, i32) {
    %c0_i32 = arith.constant 0 : i32
    %c0_i32_0 = arith.constant 0 : i32
    return %arg0, %c0_i32 : i32, i32
  }
}

</mosaic_0001>

<bundles_post_ra>
// kernel: tpu_custom_call.1
= control target key start
LH: loop header
LB: loop body
LE: loop exit
PB: predicated region body
PF: predicated region fallthrough
CT: control target
= control target key end

     0   :  { %v168_v28 = vlaneseq  ;;  %v1242_v36 = vmov 1966171168   ;;  %s1526_s0 = inlined_call_operand.vmem [shape: bf16[2,1024], index: 0, kind: input, shape index: {}]   ;;  %s1527_s1 = inlined_call_operand.vmem [shape: bf16[1024,32], index: 1, kind: input, shape index: {}]   ;;  %s1528_s2 = inlined_call_operand.vmem [shape: f32[1,32], index: 2, kind: input, shape index: {}]   ;;  %s1529_s3 = inlined_call_operand.vmem [shape: bf16[32,128], index: 3, kind: input, shape index: {}]   ;;  %s1530_s4 = inlined_call_operand.vmem [shape: f32[1,128], index: 4, kind: input, shape index: {}]   ;;  %s1531_s5 = inlined_call_operand.hbm [shape: f32[2,128], index: 5, kind: output, shape index: {}]  }
   0x1   :  { %v1153_v0 = vld [vmem:[%s1527_s1 + $0x78] sm:$0xff]   ;;  %v1157_v4 = vld [vmem:[%s1527_s1 + $0x70] sm:$0xff]   ;;  %v1161_v8 = vld [vmem:[%s1527_s1 + $0x68] sm:$0xff]   ;;  %v166_v37 = vunpack.c.l.s4 %v1242_v36 }
   0x2   :  { %v1154_v1 = vld [vmem:[%s1527_s1 + $0xf8] sm:$0xff]   ;;  %1050 = vmatprep.subr.bf16.mxu0 %v1153_v0  ;;  %v1158_v5 = vld [vmem:[%s1527_s1 + $0xf0] sm:$0xff]   ;;  %v1162_v9 = vld [vmem:[%s1527_s1 + $0xe8] sm:$0xff]   ;;  %v169_v33 = vshrl.u32 %v168_v28, 7 }
   0x3   :  { %v1155_v2 = vld [vmem:[%s1527_s1 + $0x38] sm:$0xff]   ;;  %1072 = vmatprep.subr.bf16.mxu1 %v1154_v1  ;;  %v1159_v6 = vld [vmem:[%s1527_s1 + $0x30] sm:$0xff]   ;;  %v1163_v10 = vld [vmem:[%s1527_s1 + $0x28] sm:$0xff]   ;;  %v167_v40 = vunpack.c.0.s8 %v166_v37 }
   0x4   :  { %v1156_v3 = vld [vmem:[%s1527_s1 + $0xb8] sm:$0xff]   ;;  %1051 = vmatpush3.bf16.msra.mxu0 %v1155_v2  ;;  %v1160_v7 = vld [vmem:[%s1527_s1 + $0xb0] sm:$0xff]   ;;  %v1164_v11 = vld [vmem:[%s1527_s1 + $0xa8] sm:$0xff]  }
   0x5   :  { %1073 = vmatpush3.bf16.msra.mxu1 %v1156_v3  ;;  %1052 = vmatprep.subr.bf16.mxu0 %v1157_v4  ;;  %v1165_v12 = vld [vmem:[%s1527_s1 + $0x60] sm:$0xff]   ;;  %v1169_v16 = vld [vmem:[%s1527_s1 + $0x58] sm:$0xff]   ;;  %v1173_v20 = vld [vmem:[%s1527_s1 + $0x50] sm:$0xff]   ;;  %v1381_v41 = vsub.s32 %v167_v40, %v169_v33 }
   0x6   :  { %1074 = vmatprep.subr.bf16.mxu1 %v1158_v5  ;;  %v1166_v13 = vld [vmem:[%s1527_s1 + $0xe0] sm:$0xff]   ;;  %v1170_v17 = vld [vmem:[%s1527_s1 + $0xd8] sm:$0xff]   ;;  %v1174_v21 = vld [vmem:[%s1527_s1 + $0xd0] sm:$0xff]  }
   0x7   :  { %v1167_v14 = vld [vmem:[%s1527_s1 + $0x20] sm:$0xff]   ;;  %v1171_v18 = vld [vmem:[%s1527_s1 + $0x18] sm:$0xff]   ;;  %v1175_v22 = vld [vmem:[%s1527_s1 + $0x10] sm:$0xff]  }
   0x8   :  { %1053 = vmatpush3.bf16.msra.mxu0 %v1159_v6  ;;  %v1168_v15 = vld [vmem:[%s1527_s1 + $0xa0] sm:$0xff]   ;;  %v1172_v19 = vld [vmem:[%s1527_s1 + $0x98] sm:$0xff]   ;;  %v1176_v23 = vld [vmem:[%s1527_s1 + $0x90] sm:$0xff]  }
   0x9   :  { %1075 = vmatpush3.bf16.msra.mxu1 %v1160_v7  ;;  %1054 = vmatprep.subr.bf16.mxu0 %v1161_v8  ;;  %v1177_v24 = vld [vmem:[%s1527_s1 + $0x48] sm:$0xff]   ;;  %v1181_v29 = vld [vmem:[%s1527_s1 + $0x40] sm:$0xff]   ;;  %v1186_v35 = vld [vmem:[%s1527_s1 + $0x178] sm:$0xff]  }
   0xa   :  { %1076 = vmatprep.subr.bf16.mxu1 %v1162_v9  ;;  %v1178_v25 = vld [vmem:[%s1527_s1 + $0xc8] sm:$0xff]   ;;  %v1182_v30 = vld [vmem:[%s1527_s1 + $0xc0] sm:$0xff]   ;;  %v1187_v38 = vld [vmem:[%s1527_s1 + $0x1f8] sm:$0xff]  }
   0xb   :  { %v1179_v26 = vld [vmem:[%s1527_s1 + $0x8] sm:$0xff]   ;;  %v1183_v31 = vld [vmem:[%s1527_s1] sm:$0xff]   ;;  %v1188_v47 = vld [vmem:[%s1527_s1 + $0x138] sm:$0xff]  }
   0xc   :  { %1055 = vmatpush3.bf16.msra.mxu0 %v1163_v10  ;;  %v1180_v27 = vld [vmem:[%s1527_s1 + $0x88] sm:$0xff]   ;;  %v1184_v32 = vld [vmem:[%s1527_s1 + $0x80] sm:$0xff]   ;;  %v1189_v49 = vld [vmem:[%s1527_s1 + $0x1b8] sm:$0xff]  }
   0xd   :  { %1077 = vmatpush3.bf16.msra.mxu1 %v1164_v11  ;;  %1056 = vmatprep.subr.bf16.mxu0 %v1165_v12  ;;  %v22_v34 = vld [vmem:[%s1526_s0] sm:$0xff]  ;;  %v1190_v52 = vld [vmem:[%s1527_s1 + $0x170] sm:$0xff]   ;;  %v1194_v58 = vld [vmem:[%s1527_s1 + $0x168] sm:$0xff]  }
   0xe   :  { %1078 = vmatprep.subr.bf16.mxu1 %v1166_v13  ;;  %v164_v39 = vcombine.high %v22_v34, %v22_v34  ;;  %v171_v42 = vrot.slane %v22_v34, %v1381_v41  ;;  %v1191_v54 = vld [vmem:[%s1527_s1 + $0x1f0] sm:$0xff]   ;;  %v1195_v59 = vld [vmem:[%s1527_s1 + $0x1e8] sm:$0xff]   ;;  %v1198_v62 = vld [vmem:[%s1527_s1 + $0x160] sm:$0xff]  }
   0xf   :  { %v1192_v55 = vld [vmem:[%s1527_s1 + $0x130] sm:$0xff]   ;;  %v1196_v60 = vld [vmem:[%s1527_s1 + $0x128] sm:$0xff]   ;;  %v1199_v63 = vld [vmem:[%s1527_s1 + $0x1e0] sm:$0xff]  }
  0x10   :  { %1057 = vmatpush3.bf16.msra.mxu0 %v1167_v14  ;;  %v1385_v43 = vrot.slane %v164_v39, %v1381_v41  ;;  %v179_v44 = vcombine.high %v171_v42, %v171_v42  ;;  %v187_v45 = vrot.slane %v171_v42, %v1381_v41  ;;  %v1193_v57 = vld [vmem:[%s1527_s1 + $0x1b0] sm:$0xff]   ;;  %v1197_v61 = vld [vmem:[%s1527_s1 + $0x1a8] sm:$0xff]   ;;  %v1200_v0 = vld [vmem:[%s1527_s1 + $0x120] sm:$0xff]  }
  0x11   :  { %1079 = vmatpush3.bf16.msra.mxu1 %v1168_v15  ;;  %1058 = vmatprep.subr.bf16.mxu0 %v1169_v16  ;;  %v1201_v1 = vld [vmem:[%s1527_s1 + $0x1a0] sm:$0xff]   ;;  %v1202_v2 = vld [vmem:[%s1527_s1 + $0x158] sm:$0xff]   ;;  %v1206_v6 = vld [vmem:[%s1527_s1 + $0x150] sm:$0xff]  }
  0x12   :  { %1080 = vmatprep.subr.bf16.mxu1 %v1170_v17  ;;  %v180_v46 = vcombine.high %v1385_v43, %v1385_v43  ;;  %v201_v48 = vrot.slane %v179_v44, %v1381_v41  ;;  %v209_v51 = vcombine.high %v187_v45, %v187_v45  ;;  %v1203_v3 = vld [vmem:[%s1527_s1 + $0x1d8] sm:$0xff]   ;;  %v1207_v7 = vld [vmem:[%s1527_s1 + $0x1d0] sm:$0xff]   ;;  %v1210_v10 = vld [vmem:[%s1527_s1 + $0x148] sm:$0xff]  }
  0x13   :  { %v1204_v4 = vld [vmem:[%s1527_s1 + $0x118] sm:$0xff]   ;;  %v1208_v8 = vld [vmem:[%s1527_s1 + $0x110] sm:$0xff]  }
  0x14   :  { %1059 = vmatpush3.bf16.msra.mxu0 %v1171_v18  ;;  %v208_v50 = vrot.slane %v180_v46, %v1381_v41  ;;  %637 = vmatprep.mubr.bf16.mxu0 %v201_v48  ;;  %v211_v53 = vcombine.high %v201_v48, %v201_v48  ;;  %v1205_v5 = vld [vmem:[%s1527_s1 + $0x198] sm:$0xff]   ;;  %v1209_v9 = vld [vmem:[%s1527_s1 + $0x190] sm:$0xff]  }
  0x15   :  { %1081 = vmatpush3.bf16.msra.mxu1 %v1172_v19  ;;  %1060 = vmatprep.subr.bf16.mxu0 %v1173_v20 }
  0x16   :  { %1082 = vmatprep.subr.bf16.mxu1 %v1174_v21  ;;  %v212_v56 = vcombine.high %v208_v50, %v208_v50  ;;  %677 = vmatprep.mubr.bf16.mxu1 %v211_v53 }
  0x18   :  { %1061 = vmatpush3.bf16.msra.mxu0 %v1175_v22 }
  0x19   :  { %1083 = vmatpush3.bf16.msra.mxu1 %v1176_v23  ;;  %1062 = vmatprep.subr.bf16.mxu0 %v1177_v24 }
  0x1a   :  { %1084 = vmatprep.subr.bf16.mxu1 %v1178_v25 }
  0x1c   :  { %1063 = vmatpush3.bf16.msra.mxu0 %v1179_v26 }
  0x1d   :  { %1085 = vmatpush3.bf16.msra.mxu1 %v1180_v27  ;;  %1064 = vmatprep.subr.bf16.mxu0 %v1181_v29 }
  0x1e   :  { %1086 = vmatprep.subr.bf16.mxu1 %v1182_v30 }
  0x20   :  { %1065 = vmatpush3.bf16.msra.mxu0 %v1183_v31 }
  0x21   :  { %1087 = vmatpush3.bf16.msra.mxu1 %v1184_v32  ;;  %1094 = vmatprep.subr.bf16.mxu0 %v1186_v35 }
  0x22   :  { %1116 = vmatprep.subr.bf16.mxu1 %v1187_v38 }
  0x23   :  { %638 = vmatmul.mubr.bf16.vlgmr.msra.gmra.mxu0 %v187_v45 }
  0x24   :  { %1095 = vmatpush3.bf16.msra.mxu0 %v1188_v47  ;;  %678 = vmatmul.mubr.bf16.vlgmr.msra.gmra.mxu1 %v209_v51 }
  0x25   :  { %1096 = vmatprep.subr.bf16.mxu0 %v1190_v52  ;;  %1117 = vmatpush3.bf16.msra.mxu1 %v1189_v49 }
  0x26   :  { %717 = vmatprep.mubr.bf16.mxu0 %v208_v50  ;;  %1118 = vmatprep.subr.bf16.mxu1 %v1191_v54 }
  0x27   :  { %757 = vmatprep.mubr.bf16.mxu1 %v212_v56 }
  0x28   :  { %1097 = vmatpush3.bf16.msra.mxu0 %v1192_v55 }
  0x29   :  { %1098 = vmatprep.subr.bf16.mxu0 %v1194_v58  ;;  %1119 = vmatpush3.bf16.msra.mxu1 %v1193_v57 }
  0x2a   :  { %1120 = vmatprep.subr.bf16.mxu1 %v1195_v59 }
  0x2c   :  { %1099 = vmatpush3.bf16.msra.mxu0 %v1196_v60 }
  0x2d   :  { %1100 = vmatprep.subr.bf16.mxu0 %v1198_v62  ;;  %1121 = vmatpush3.bf16.msra.mxu1 %v1197_v61 }
  0x2e   :  { %1122 = vmatprep.subr.bf16.mxu1 %v1199_v63 }
  0x30   :  { %1101 = vmatpush3.bf16.msra.mxu0 %v1200_v0 }
  0x31   :  { %1102 = vmatprep.subr.bf16.mxu0 %v1202_v2  ;;  %1123 = vmatpush3.bf16.msra.mxu1 %v1201_v1 }
  0x32   :  { %1124 = vmatprep.subr.bf16.mxu1 %v1203_v3 }
  0x34   :  { %1103 = vmatpush3.bf16.msra.mxu0 %v1204_v4 }
  0x35   :  { %1104 = vmatprep.subr.bf16.mxu0 %v1206_v6  ;;  %1125 = vmatpush3.bf16.msra.mxu1 %v1205_v5 }
  0x36   :  { %10 = vsyncpa [#allocation5], 0  ;;  %1126 = vmatprep.subr.bf16.mxu1 %v1207_v7  ;;  %v1211_v11 = vld [vmem:[%s1527_s1 + $0x1c8] sm:$0xff]   ;;  %v1214_v13 = vld [vmem:[%s1527_s1 + $0x140] sm:$0xff]   ;;  %v194_v17 = vrot.slane %v1385_v43, %v1381_v41  ;;  %v1243_v20 = vmov 0.0   ;;  %vm1244_vm0 = vmmov 0  }
  0x37   :  { %v1212_v12 = vld [vmem:[%s1527_s1 + $0x108] sm:$0xff]   ;;  %v1215_v15 = vld [vmem:[%s1527_s1 + $0x1c0] sm:$0xff]   ;;  %vm770_vm1 = vcmask 254976   ;;  %vm841_vm10 = vcmask 261120  }
  0x38   :  { %1105 = vmatpush3.bf16.msra.mxu0 %v1208_v8  ;;  %v1213_v14 = vld [vmem:[%s1527_s1 + $0x188] sm:$0xff]   ;;  %v1216_v16 = vld [vmem:[%s1527_s1 + $0x100] sm:$0xff]   ;;  %v210_v19 = vcombine.high %v194_v17, %v194_v17 }
  0x39   :  { %1106 = vmatprep.subr.bf16.mxu0 %v1210_v10  ;;  %1127 = vmatpush3.bf16.msra.mxu1 %v1209_v9  ;;  %v1217_v18 = vld [vmem:[%s1527_s1 + $0x180] sm:$0xff]   ;;  %v1218_v21 = vld [vmem:[%s1529_s3 + $0x8] sm:$0xff]  }
  0x3a   :  { %1128 = vmatprep.subr.bf16.mxu1 %v1211_v11  ;;  %v1219_v22 = vld [vmem:[%s1529_s3] sm:$0xff]  }
  0x3b   :  { %v965_v32 = vld [vmem:[%s1528_s2] ss:$0 sm:$0xff] }
  0x3c   :  { %1107 = vmatpush3.bf16.msra.mxu0 %v1212_v12 }
  0x3d   :  { %1108 = vmatprep.subr.bf16.mxu0 %v1214_v13  ;;  %1129 = vmatpush3.bf16.msra.mxu1 %v1213_v14 }
  0x3e   :  { %1130 = vmatprep.subr.bf16.mxu1 %v1215_v15 }
  0x40   :  { %1109 = vmatpush3.bf16.msra.mxu0 %v1216_v16  ;;  %v1038_v16 = vld [vmem:[%s1530_s4] ss:$0 sm:$0xff]  ;;  %s1245_s4 = smov [#allocation4]  }
  0x41   :  { %1131 = vmatpush3.bf16.msra.mxu1 %v1217_v18  ;;  %1141 = vmatprep.subr.bf16.mxu0 %v1243_v20  ;;  %s957_s25 = sshll.u32 %s1245_s4, 4  ;;  %s958_s25 = int_to_ptr.vmem [resolvable:$true] %s957_s25 }
  0x42   :  { %s1220_s26 = scalar_lea.vmem %s958_s25, 32  ;;  %p1225_p1 = scmp.lt.s32.totalorder %s958_s25, %s958_s25 }
  0x43   :  { %718 = vmatmul.mubr.bf16.vlgmr.msra.gmra.mxu0 %v194_v17  ;;  %p1221_p0 = scmp.ne.s32.totalorder %s958_s25, %s1220_s26  ;;  %p1226_p2 = scmp.lt.s32.totalorder %s1220_s26, %s1220_s26 }
  0x44   :  { %758 = vmatmul.mubr.bf16.vlgmr.msra.gmra.mxu1 %v210_v19  ;;  %1145 = vmatprep.mubr.msk.bf16.mxu0 %vm1244_vm0, %v1243_v20 }
  0x45   :  { %1142 = vmatpush3.bf16.msra.mxu0 %v1218_v21  ;;  %p1227_p3 = por %p1226_p2, %p1225_p1 }
  0x46   :  { %1143 = vmatprep.subr.bf16.mxu0 %v1243_v20 }
  0x47   :  { %p1228_p4 = pnand %p1227_p3, %p1221_p0 }
  0x49   :  { %1144 = vmatpush3.bf16.msra.mxu0 %v1219_v22 }
  0xe3   :  { %v1066_v23 = vpop.f32.mrf.mxu0 }
  0xe4   :  { %v1088_v24 = vpop.f32.mrf.mxu1 }
  0xe5   :  { %v1067_v25 = vpop.f32.mrf.mxu0 }
  0xe6   :  { %v1089_v26 = vpop.f32.mrf.mxu1  ;;  %v1068_v31 = vadd.f32 %v1067_v25, %v1066_v23 }
  0xe7   :  { %v1069_v27 = vpop.f32.mrf.mxu0  ;;  %v1090_v34 = vadd.f32 %v1089_v26, %v1088_v24 }
  0xe8   :  { %v1091_v28 = vpop.f32.mrf.mxu1  ;;  %v640_v33 = vadd.f32 %v1068_v31, %v965_v32 }
  0xe9   :  { %v1070_v29 = vpop.f32.mrf.mxu0 }
  0xea   :  { %v1092_v30 = vpop.f32.mrf.mxu1  ;;  %v680_v38 = vadd.f32 %v1090_v34, %v640_v33 }
 0x103   :  { %v1110_v35 = vpop.f32.mrf.mxu0 }
 0x104   :  { %v1132_v36 = vpop.f32.mrf.mxu1 }
 0x105   :  { %v1111_v37 = vpop.f32.mrf.mxu0 }
 0x106   :  { %v1112_v39 = vadd.f32 %v1111_v37, %v1110_v35  ;;  %v1133_v40 = vpop.f32.mrf.mxu1 }
 0x107   :  { %v1113_v41 = vpop.f32.mrf.mxu0  ;;  %v1134_v43 = vadd.f32 %v1133_v40, %v1132_v36 }
 0x108   :  { %v720_v42 = vadd.f32 %v1112_v39, %v680_v38  ;;  %v1135_v44 = vpop.f32.mrf.mxu1 }
 0x109   :  { %v1114_v45 = vpop.f32.mrf.mxu0 }
 0x10a   :  { %v760_v46 = vadd.f32 %v1134_v43, %v720_v42  ;;  %v1136_v47 = vpop.f32.mrf.mxu1 }
 0x10c   :  { %vm766_vm2 = vcmp.gt.f32.partialorder %v760_v46, 1.0 }
 0x10d   :  { %v1030_v48 = vsel %vm766_vm2, 1.0, %v1243_v20 }
 0x10e   :  { %v769_v49 = vsub.f32 %v760_v46, %v1030_v48  ;;  %771 = vst.msk [vmem:[#allocation2] sm:$0x3] %vm770_vm1, %v1030_v48 }
 0x110   :  { %v772_v50 = vmul.f32 0.95, %v769_v49 }
 0x112   :  { %v773_v51 = vadd.f32 %v772_v50, %v760_v46 }
 0x114   :  { %vm774_vm3 = vcmp.gt.f32.partialorder %v773_v51, 1.0 }
 0x115   :  { %v1031_v52 = vsel %vm774_vm3, 1.0, %v1243_v20 }
 0x116   :  { %v777_v53 = vsub.f32 %v773_v51, %v1031_v52  ;;  %778 = vst.msk [vmem:[#allocation2 + $0x2] sm:$0x3] %vm770_vm1, %v1031_v52 }
 0x118   :  { %v779_v54 = vmul.f32 0.95, %v777_v53 }
 0x11a   :  { %v780_v55 = vadd.f32 %v779_v54, %v760_v46 }
 0x11c   :  { %vm781_vm4 = vcmp.gt.f32.partialorder %v780_v55, 1.0 }
 0x11d   :  { %v1032_v56 = vsel %vm781_vm4, 1.0, %v1243_v20 }
 0x11e   :  { %v784_v57 = vsub.f32 %v780_v55, %v1032_v56  ;;  %785 = vst.msk [vmem:[#allocation2 + $0x4] sm:$0x3] %vm770_vm1, %v1032_v56 }
 0x120   :  { %v786_v58 = vmul.f32 0.95, %v784_v57 }
 0x122   :  { %v787_v59 = vadd.f32 %v786_v58, %v760_v46 }
 0x124   :  { %vm788_vm5 = vcmp.gt.f32.partialorder %v787_v59, 1.0 }
 0x125   :  { %v1033_v60 = vsel %vm788_vm5, 1.0, %v1243_v20 }
 0x126   :  { %v791_v61 = vsub.f32 %v787_v59, %v1033_v60  ;;  %792 = vst.msk [vmem:[#allocation2 + $0x6] sm:$0x3] %vm770_vm1, %v1033_v60 }
 0x128   :  { %v793_v62 = vmul.f32 0.95, %v791_v61 }
 0x12a   :  { %v794_v63 = vadd.f32 %v793_v62, %v760_v46 }
 0x12c   :  { %vm795_vm6 = vcmp.gt.f32.partialorder %v794_v63, 1.0 }
 0x12d   :  { %v1034_v0 = vsel %vm795_vm6, 1.0, %v1243_v20  ;;  %v820_v13 = vld [vmem:[#allocation2] sm:$0xff] }
 0x12e   :  { %v798_v1 = vsub.f32 %v794_v63, %v1034_v0  ;;  %799 = vst.msk [vmem:[#allocation2 + $0x8] sm:$0x3] %vm770_vm1, %v1034_v0 }
 0x130   :  { %v800_v2 = vmul.f32 0.95, %v798_v1 }
 0x132   :  { %v801_v3 = vadd.f32 %v800_v2, %v760_v46 }
 0x134   :  { %vm802_vm7 = vcmp.gt.f32.partialorder %v801_v3, 1.0 }
 0x135   :  { %v1035_v4 = vsel %vm802_vm7, 1.0, %v1243_v20 }
 0x136   :  { %v805_v5 = vsub.f32 %v801_v3, %v1035_v4  ;;  %806 = vst.msk [vmem:[#allocation2 + $0xa] sm:$0x3] %vm770_vm1, %v1035_v4 }
 0x138   :  { %v807_v6 = vmul.f32 0.95, %v805_v5 }
 0x13a   :  { %v808_v7 = vadd.f32 %v807_v6, %v760_v46 }
 0x13c   :  { %vm809_vm8 = vcmp.gt.f32.partialorder %v808_v7, 1.0 }
 0x13d   :  { %v1036_v8 = vsel %vm809_vm8, 1.0, %v1243_v20 }
 0x13e   :  { %v812_v9 = vsub.f32 %v808_v7, %v1036_v8  ;;  %813 = vst.msk [vmem:[#allocation2 + $0xc] sm:$0x3] %vm770_vm1, %v1036_v8 }
 0x140   :  { %v814_v10 = vmul.f32 0.95, %v812_v9 }
 0x142   :  { %v815_v11 = vadd.f32 %v814_v10, %v760_v46 }
 0x144   :  { %vm816_vm9 = vcmp.gt.f32.partialorder %v815_v11, 1.0 }
 0x145   :  { %v1037_v12 = vsel %vm816_vm9, 1.0, %v1243_v20 }
 0x146   :  { %819 = vst.msk [vmem:[#allocation2 + $0xe] sm:$0x3] %vm770_vm1, %v1037_v12 }
 0x14d   :  { %v821_v14 = vld [vmem:[#allocation2 + $0x8] sm:$0xff] }
 0x14e   :  { %v822_v15 = vpack.c.bf16 %v821_v14, %v820_v13 }
 0x150   :  { %1146 = vmatmul.mubr.msk.bf16.vlgmr.msra.gmra.mxu0 %vm841_vm10, %v822_v15 }
 0x210   :  { %v879_v17 = vpop.f32.mrf.mxu0 }
 0x211   :  { %v880_v18 = vadd.f32 %v1038_v16, %v879_v17 }
 0x212   :  { %v1147_v19 = vpop.f32.mrf.mxu0 }
 0x213   :  { %886 = vst [vmem:[#allocation3] sm:$0xff] %v880_v18 }
 0x214   :  { %v882_v21 = vpop.f32.mrf.mxu0 }
 0x215   :  { %v883_v22 = vadd.f32 %v1038_v16, %v882_v21 }
 0x216   :  { %v1148_v23 = vpop.f32.mrf.mxu0 }
 0x217   :  { %887 = vst [vmem:[#allocation3 + $0x8] sm:$0xff] %v883_v22 }
 0x21a   :  { %v888_v24 = vld [vmem:[#allocation3] sm:$0x3]  ;;  %v895_v28 = vld [vmem:[#allocation3 + $0x2] sm:$0x3]  ;;  %v903_v33 = vld [vmem:[#allocation3 + $0x4] sm:$0x3] }
 0x21b   :  { %vm890_vm11 = vcmp.gt.f32.partialorder %v888_v24, 1.0  ;;  %v911_v38 = vld [vmem:[#allocation3 + $0x6] sm:$0x3] }
 0x21c   :  { %v1042_v25 = vsel %vm890_vm11, 1.0, %v1243_v20 }
 0x21d   :  { %v893_v26 = vsub.f32 %v888_v24, %v1042_v25 }
 0x21e   :  { %v919_v43 = vld [vmem:[#allocation3 + $0x8] sm:$0x3]  ;;  %v927_v48 = vld [vmem:[#allocation3 + $0xa] sm:$0x3]  ;;  %v935_v53 = vld [vmem:[#allocation3 + $0xc] sm:$0x3] }
 0x21f   :  { %v896_v27 = vmul.f32 0.95, %v893_v26  ;;  %v943_v62 = vld [vmem:[#allocation3 + $0xe] sm:$0x3] }
 0x221   :  { %v897_v29 = vadd.f32 %v896_v27, %v895_v28 }
 0x223   :  { %vm898_vm12 = vcmp.gt.f32.partialorder %v897_v29, 1.0 }
 0x224   :  { %v1043_v30 = vsel %vm898_vm12, 1.0, %v1243_v20 }
 0x225   :  { %v901_v31 = vsub.f32 %v897_v29, %v1043_v30  ;;  %v902_v54 = vadd.f32 %v1043_v30, %v1042_v25 }
 0x227   :  { %v904_v32 = vmul.f32 0.95, %v901_v31 }
 0x229   :  { %v905_v34 = vadd.f32 %v904_v32, %v903_v33 }
 0x22b   :  { %vm906_vm13 = vcmp.gt.f32.partialorder %v905_v34, 1.0 }
 0x22c   :  { %v1044_v35 = vsel %vm906_vm13, 1.0, %v1243_v20 }
 0x22d   :  { %v909_v36 = vsub.f32 %v905_v34, %v1044_v35  ;;  %v910_v56 = vadd.f32 %v1044_v35, %v902_v54 }
 0x22f   :  { %v912_v37 = vmul.f32 0.95, %v909_v36 }
 0x231   :  { %v913_v39 = vadd.f32 %v912_v37, %v911_v38 }
 0x233   :  { %vm914_vm14 = vcmp.gt.f32.partialorder %v913_v39, 1.0 }
 0x234   :  { %v1045_v40 = vsel %vm914_vm14, 1.0, %v1243_v20 }
 0x235   :  { %v917_v41 = vsub.f32 %v913_v39, %v1045_v40  ;;  %v918_v58 = vadd.f32 %v1045_v40, %v910_v56 }
 0x237   :  { %v920_v42 = vmul.f32 0.95, %v917_v41 }
 0x239   :  { %v921_v44 = vadd.f32 %v920_v42, %v919_v43 }
 0x23b   :  { %vm922_vm15 = vcmp.gt.f32.partialorder %v921_v44, 1.0 }
 0x23c   :  { %v1046_v45 = vsel %vm922_vm15, 1.0, %v1243_v20 }
 0x23d   :  { %v925_v46 = vsub.f32 %v921_v44, %v1046_v45  ;;  %v926_v60 = vadd.f32 %v1046_v45, %v918_v58 }
 0x23f   :  { %v928_v47 = vmul.f32 0.95, %v925_v46 }
 0x241   :  { %v929_v49 = vadd.f32 %v928_v47, %v927_v48 }
 0x243   :  { %vm930_vm0 = vcmp.gt.f32.partialorder %v929_v49, 1.0 }
 0x244   :  { %v1047_v50 = vsel %vm930_vm0, 1.0, %v1243_v20 }
 0x245   :  { %v933_v51 = vsub.f32 %v929_v49, %v1047_v50  ;;  %v934_v63 = vadd.f32 %v1047_v50, %v926_v60 }
 0x247   :  { %v936_v52 = vmul.f32 0.95, %v933_v51 }
 0x249   :  { %v937_v55 = vadd.f32 %v936_v52, %v935_v53 }
 0x24b   :  { %vm938_vm1 = vcmp.gt.f32.partialorder %v937_v55, 1.0 }
 0x24c   :  { %v1048_v57 = vsel %vm938_vm1, 1.0, %v1243_v20 }
 0x24d   :  { %v941_v59 = vsub.f32 %v937_v55, %v1048_v57  ;;  %v942_v1 = vadd.f32 %v1048_v57, %v934_v63 }
 0x24f   :  { %v944_v61 = vmul.f32 0.95, %v941_v59 }
 0x251   :  { %v945_v0 = vadd.f32 %v944_v61, %v943_v62 }
 0x253   :  { %vm946_vm2 = vcmp.gt.f32.partialorder %v945_v0, 1.0 }
 0x254   :  { %v1049_v2 = vsel %vm946_vm2, 1.0, %v1243_v20 }
 0x255   :  { %v949_v3 = vadd.f32 %v1049_v2, %v942_v1 }
 0x257   :  { %950 = vst [vmem:[#allocation4] sm:$0x3] %v949_v3 }
 0x258   :  { %1231 = shalt.err (!%p1228_p4)
}
 0x259   :  { %960 = dma.vmem_to_hbm [thread:$0]  %s958_s25, 32, %s1531_s5, [#allocation5]  }
 0x25a   :  { %1240 = dma.done.wait [#allocation5], 32  }
 0x25b   :  { %1241 = vsyncadd [#allocation5], 4294967264 }
 0x25c   :  { %964 = vsyncpa [#allocation5], 1 }

</bundles_post_ra>
